<compile_context>
chip_gen: v7x
topology: tpu7x:2x2x1
jax: 0.10.0
libtpu: 0.0.40
codegen_flags: <defaults>
</compile_context>

<pallas_src>
import functools

import jax
import jax.numpy as jnp
from jax.experimental import pallas as pl
from jax.experimental.pallas import tpu as pltpu


def _round_up(x, m):
    return (x + m - 1) // m * m


# --------------------------------------------------------------------------
# Fused-im2col conv (+ bias) on the wide flat spatial coordinate q = ho*Wp + wo,
# with the global-average-pool partial sums fused in.  One MXU pass per tile.
# --------------------------------------------------------------------------
def _conv_pool_kernel(x_lo_ref, x_hi_ref, w_ref, b_ref, mask_ref,
                      y_ref, psum_ref, xk_ref, *, taps, tq, cin_p):
    xlo = x_lo_ref[0]                       # (Cin_p, TQ)        bf16
    xhi = x_hi_ref[0]                       # (Cin_p, halo_pad)  bf16

    # Build the K-stacked im2col slab (kh*kw*Cin_p, TQ) from shifted slices; the
    # [M, Cin*k*k] im2col matrix never touches HBM, and the lane shifts amortize
    # over one large matmul instead of kh*kw small ones.
    for t, d in enumerate(taps):            # static unroll over kh*kw taps
        r0 = t * cin_p
        if d == 0:
            xk_ref[r0:r0 + cin_p, :] = xlo
        elif d < tq:
            xk_ref[r0:r0 + cin_p, :tq - d] = xlo[:, d:]
            xk_ref[r0:r0 + cin_p, tq - d:] = xhi[:, :d]
        else:                               # d == tq (halo spans exactly one tile)
            xk_ref[r0:r0 + cin_p, :] = xhi[:, :tq]

    # Single MXU pass: bf16 x bf16 -> f32 accumulate, K = kh*kw*Cin_p.
    y = jnp.dot(w_ref[...], xk_ref[...],
                preferred_element_type=jnp.float32) + b_ref[...]

    y_ref[0] = y.astype(y_ref.dtype)        # bf16 writeback (halves the dominant stream)

    # Fused AdaptiveAvgPool2d(1): per-(batch, q-tile) partial sums over the valid,
    # stride-hit output positions (mask zeroes wide "garbage" columns / tail).
    # TODO(synk): generate the mask in-kernel from broadcasted_iota to drop this DMA.
    psum_ref[0, 0] = jnp.sum(y * mask_ref[0], axis=-1, keepdims=True)


# --------------------------------------------------------------------------
# Full module forward (batchnorm=False, the module default)
# --------------------------------------------------------------------------
# TODO(synk): batchnorm=True branch (nn.BatchNorm2d) not implemented; module default is False.
@functools.partial(jax.jit, static_argnames=("stride", "padding"))
def conv_2d_forward(x, w_conv, b_conv, w_gate, b_gate, *, stride, padding):
    """x: [N, Cin, H, W]; w_conv: [Cout, Cin, kh, kw]; b_conv: [Cout];
    w_gate: [Cout, Cout, 1, 1]; b_gate: [Cout]  ->  [N, Cout, Ho, Wo] (NCHW, f32)."""
    N, Cin, H, W = x.shape
    Cout, _, kh, kw = w_conv.shape
    s, p = stride, padding

    Hp, Wp = H + 2 * p, W + 2 * p
    Ho_d = Hp - kh + 1                      # dense (stride-1) output rows
    Ho = (Hp - kh) // s + 1
    Wo = (Wp - kw) // s + 1
    assert Ho_d >= 1 and Wo >= 1

    # wide flat output coordinate q = ho*Wp + wo (row pitch Wp -> every tap is a shift)
    Q = Ho_d * Wp
    halo = (kh - 1) * Wp + (kw - 1)         # largest tap shift
    halo_pad = _round_up(max(halo, 1), 128)

    Cin_p = _round_up(Cin, 16)              # bf16 sublane packing on the contraction dim
    Cout_p = _round_up(Cout, 8)             # sublane granule only; lane axis stays wide
    Kfold = kh * kw * Cin_p                 # taps folded into the MXU contraction

    # Lane-tile TQ: multiple of halo_pad (so the halo block index is exact), grown as
    # large as a conservative VMEM budget allows (double-buffered blocks, v7x-safe).
    def _vmem_bytes(tq):
        return (2 * (Cin_p * tq + Cin_p * halo_pad + Cout_p * tq) * 2   # x_lo, x_hi, y (2-buf, bf16)
                + Kfold * tq * 2                                        # K-stacked scratch
                + 2 * Kfold * Cout_p * 2                                # folded weights (2-buf)
                + 2 * (tq + 2 * Cout_p) * 4)                            # mask, bias, psum blocks

    q_need = _round_up(Q, halo_pad)
    tq_cap = max(halo_pad, min(2048, q_need))
    TQ = halo_pad
    while TQ + halo_pad <= tq_cap and _vmem_bytes(TQ + halo_pad) <= 24 * 1024 * 1024:
        TQ += halo_pad
    assert TQ % 128 == 0 and TQ >= halo

    nQ = (Q + TQ - 1) // TQ
    Q_pad = nQ * TQ
    L_pad = Q_pad + halo_pad                # room for the last tile's halo

    # ------------- glue: pad + flatten (one pass over x; no k*k im2col slab in HBM) ----
    x_pad = jnp.pad(x, ((0, 0), (0, 0), (p, p), (p, p)))
    xf = jnp.zeros((N, Cin_p, L_pad), jnp.bfloat16)
    xf = xf.at[:, :Cin, :Hp * Wp].set(
        x_pad.reshape(N, Cin, Hp * Wp).astype(jnp.bfloat16))

    # Folded conv weights (Cout_p, kh*kw*Cin_p), tap-major / Cin-minor to match the
    # K-stacked scratch layout; bias kept in f32.
    wt = jnp.transpose(w_conv, (0, 2, 3, 1)).reshape(Cout, kh * kw, Cin)
    w_fold = jnp.zeros((Cout_p, kh * kw, Cin_p), jnp.float32)
    w_fold = w_fold.at[:Cout, :, :Cin].set(wt)
    w_fold = w_fold.reshape(Cout_p, Kfold).astype(jnp.bfloat16)
    b_p = jnp.zeros((Cout_p, 1), jnp.float32).at[:Cout, 0].set(b_conv)

    # Pooling mask over the wide coordinate: valid, stride-hit output positions only.
    q_idx = jnp.arange(Q_pad, dtype=jnp.int32)
    r, c = q_idx // Wp, q_idx % Wp
    mask = ((q_idx < Q) & (r % s == 0) & (r // s < Ho)
            & (c % s == 0) & (c // s < Wo)).astype(jnp.float32).reshape(1, 1, Q_pad)

    taps = tuple(i * Wp + j for i in range(kh) for j in range(kw))
    kernel = functools.partial(_conv_pool_kernel, taps=taps, tq=TQ, cin_p=Cin_p)
    halo_blocks = TQ // halo_pad            # static: halo block index multiplier

    # TODO(synk): for very deep UNet layers (Cin,Cout >= 512) add Cout/K grid tiling and
    #             pipeline_mode=pl.Buffered(1) on the weight spec for v7x's 64 MiB VMEM.
    # TODO(synk): stride > 1 still evaluates the dense stride-1 conv and subsamples at
    #             the end (s^2 extra MACs, one bf16 write); skip non-stride-hit rows.
    y_wide, psum = pl.pallas_call(
        kernel,
        out_shape=(jax.ShapeDtypeStruct((N, Cout_p, Q_pad), jnp.bfloat16),
                   jax.ShapeDtypeStruct((N, nQ, Cout_p, 1), jnp.float32)),
        grid_spec=pltpu.PrefetchScalarGridSpec(
            num_scalar_prefetch=0,
            grid=(N, nQ),
            in_specs=[
                pl.BlockSpec((1, Cin_p, TQ), lambda n, q: (n, 0, q)),        # current tile
                pl.BlockSpec((1, Cin_p, halo_pad),                           # right halo only
                             lambda n, q: (n, 0, (q + 1) * halo_blocks)),
                pl.BlockSpec((Cout_p, Kfold), lambda n, q: (0, 0)),          # folded weights
                pl.BlockSpec((Cout_p, 1), lambda n, q: (0, 0)),              # bias
                pl.BlockSpec((1, 1, TQ), lambda n, q: (0, 0, q)),            # pool mask
            ],
            out_specs=(
                pl.BlockSpec((1, Cout_p, TQ), lambda n, q: (n, 0, q)),       # y (bf16, wide)
                pl.BlockSpec((1, 1, Cout_p, 1), lambda n, q: (n, q, 0, 0)),  # partial pool sums
            ),
            scratch_shapes=[pltpu.VMEM((Kfold, TQ), jnp.bfloat16)],          # K-stacked slab
        ),
        compiler_params=pltpu.CompilerParams(
            dimension_semantics=("parallel", "parallel"),
            vmem_limit_bytes=48 * 1024 * 1024),
    )(xf, xf, w_fold, b_p, mask)

    # ---- SE gating epilogue (tiny XLA matmul; multiply fused into the single slice) ----
    pooled = psum.sum(axis=1)[:, :Cout, 0] * (1.0 / float(Ho * Wo))          # (N, Cout) f32
    wg = w_gate.reshape(Cout, Cout).astype(jnp.float32)
    gate = jax.nn.sigmoid(
        jnp.dot(pooled, wg.T, precision=jax.lax.Precision.HIGHEST) + b_gate)

    # single narrowing pass: wide flat layout -> NCHW (stride subsample) * per-chan gate
    y4 = y_wide[:, :Cout, :Q].reshape(N, Cout, Ho_d, Wp)
    y4 = y4[:, :, :(Ho - 1) * s + 1:s, :(Wo - 1) * s + 1:s]                  # (N,Cout,Ho,Wo)
    return y4.astype(jnp.float32) * gate[:, :, None, None]


# --------------------------------------------------------------------------
# Pure-JAX reference for correctness sanity check
# --------------------------------------------------------------------------
def _reference(x, w_conv, b_conv, w_gate, b_gate, *, stride, padding):
    # The Pallas conv feeds the MXU bf16 operands (f32 accumulate), so the reference
    # rounds the same operands to bf16 before an f32 convolution.  The kernel also
    # stores y in bf16; the scaled tolerance in __main__ covers that (<= 2^-8 relative).
    xb = x.astype(jnp.bfloat16).astype(jnp.float32)
    wb = w_conv.astype(jnp.bfloat16).astype(jnp.float32)
    y = jax.lax.conv_general_dilated(
        xb, wb, window_strides=(stride, stride),
        padding=[(padding, padding), (padding, padding)],
        dimension_numbers=("NCHW", "OIHW", "NCHW"),
        precision=jax.lax.Precision.HIGHEST,
    ) + b_conv[None, :, None, None]
    pooled = jnp.mean(y, axis=(2, 3))                                        # (N, Cout)
    wg = w_gate.reshape(w_gate.shape[0], -1)
    gate = jax.nn.sigmoid(
        jnp.dot(pooled, wg.T, precision=jax.lax.Precision.HIGHEST) + b_gate)
    return y * gate[:, :, None, None]


if __name__ == "__main__":
    in_ch, out_ch, ksize = 4, 8, 3
    N, H, W = 2, 16, 16

    key = jax.random.PRNGKey(0)
    kx, k1, k2, k3, k4 = jax.random.split(key, 5)
    x = jax.random.normal(kx, (N, in_ch, H, W), jnp.float32)
    w_conv = jax.random.normal(k1, (out_ch, in_ch, ksize, ksize), jnp.float32) * 0.1
    b_conv = jax.random.normal(k2, (out_ch,), jnp.float32) * 0.1
    w_gate = jax.random.normal(k3, (out_ch, out_ch, 1, 1), jnp.float32) * 0.1
    b_gate = jax.random.normal(k4, (out_ch,), jnp.float32) * 0.1

    for stride, padding in ((1, 1), (2, 1)):
        out = conv_2d_forward(x, w_conv, b_conv, w_gate, b_gate,
                              stride=stride, padding=padding)
        out = jax.block_until_ready(out)
        Ho = (H + 2 * padding - ksize) // stride + 1
        Wo = (W + 2 * padding - ksize) // stride + 1
        assert out.shape == (N, out_ch, Ho, Wo), out.shape

        ref = _reference(x, w_conv, b_conv, w_gate, b_gate,
                         stride=stride, padding=padding)
        # scaled tolerance: kernel stores y in bf16 before gating (<= 2^-8 relative)
        err = float(jnp.max(jnp.abs(out - ref) / (1.0 + jnp.abs(ref))))
        assert err < 5e-3, (stride, padding, err)

    print("KERNEL_OK")
</pallas_src>

<mosaic_0001>
module attributes {stable_mosaic.version = 11 : i64} {
  func.func @_conv_pool_kernel(%arg0: i32, %arg1: i32, %arg2: memref<1x16x384xbf16, #tpu.memory_space<vmem>>, %arg3: memref<1x16x128xbf16, #tpu.memory_space<vmem>>, %arg4: memref<8x144xbf16, #tpu.memory_space<vmem>>, %arg5: memref<8x1xf32, #tpu.memory_space<vmem>>, %arg6: memref<1x1x384xf32, #tpu.memory_space<vmem>>, %arg7: memref<1x8x384xbf16, #tpu.memory_space<vmem>>, %arg8: memref<1x1x8x1xf32, #tpu.memory_space<vmem>>, %arg9: memref<144x384xbf16, #tpu.memory_space<vmem>>) attributes {dimension_semantics = [#tpu.dimension_semantics<parallel>, #tpu.dimension_semantics<parallel>], iteration_bounds = array<i64: 2, 1>, scalar_prefetch = 0 : i64, scratch_operands = 1 : i64, tpu.core_type = #tpu.core_type<tc>, window_params = [{transform_indices = @transform_0, window_bounds = array<i64: 1, 16, 384>}, {transform_indices = @transform_1, window_bounds = array<i64: 1, 16, 128>}, {pipeline_mode = #tpu.pipeline_mode<synchronous>, transform_indices = @transform_2, window_bounds = array<i64: 8, 144>}, {pipeline_mode = #tpu.pipeline_mode<synchronous>, transform_indices = @transform_3, window_bounds = array<i64: 8, 1>}, {transform_indices = @transform_4, window_bounds = array<i64: 1, 1, 384>}, {transform_indices = @transform_5, window_bounds = array<i64: 1, 8, 384>}, {transform_indices = @transform_6, window_bounds = array<i64: 1, 1, 8, 1>}]} {
    %c0 = arith.constant 0 : index
    %c0_0 = arith.constant 0 : index
    %c0_1 = arith.constant 0 : index
    %0 = vector.load %arg2[%c0, %c0_0, %c0_1] : memref<1x16x384xbf16, #tpu.memory_space<vmem>>, vector<1x16x384xbf16>
    %1 = vector.shape_cast %0 : vector<1x16x384xbf16> to vector<16x384xbf16>
    %c0_2 = arith.constant 0 : index
    %c0_3 = arith.constant 0 : index
    %c0_4 = arith.constant 0 : index
    %2 = vector.load %arg3[%c0_2, %c0_3, %c0_4] : memref<1x16x128xbf16, #tpu.memory_space<vmem>>, vector<1x16x128xbf16>
    %3 = vector.shape_cast %2 : vector<1x16x128xbf16> to vector<16x128xbf16>
    %c0_5 = arith.constant 0 : index
    %c0_6 = arith.constant 0 : index
    %4 = vector.load %arg9[%c0_5, %c0_6] : memref<144x384xbf16, #tpu.memory_space<vmem>>, vector<16x384xbf16>
    tpu.vector_store %arg9[%c0_5, %c0_6], %1 {strides = array<i32>} : memref<144x384xbf16, #tpu.memory_space<vmem>>, vector<16x384xbf16>,
    %5 = vector.extract_strided_slice %1 {offsets = [0, 1], sizes = [16, 383], strides = [1, 1]} : vector<16x384xbf16> to vector<16x383xbf16>
    %c16 = arith.constant 16 : index
    %c0_7 = arith.constant 0 : index
    %6 = vector.load %arg9[%c16, %c0_7] : memref<144x384xbf16, #tpu.memory_space<vmem>>, vector<16x383xbf16>
    tpu.vector_store %arg9[%c16, %c0_7], %5 {strides = array<i32>} : memref<144x384xbf16, #tpu.memory_space<vmem>>, vector<16x383xbf16>,
    %7 = vector.extract_strided_slice %3 {offsets = [0, 0], sizes = [16, 1], strides = [1, 1]} : vector<16x128xbf16> to vector<16x1xbf16>
    %c16_8 = arith.constant 16 : index
    %c383 = arith.constant 383 : index
    %8 = vector.load %arg9[%c16_8, %c383] : memref<144x384xbf16, #tpu.memory_space<vmem>>, vector<16x1xbf16>
    tpu.vector_store %arg9[%c16_8, %c383], %7 {strides = array<i32>} : memref<144x384xbf16, #tpu.memory_space<vmem>>, vector<16x1xbf16>,
    %9 = vector.extract_strided_slice %1 {offsets = [0, 2], sizes = [16, 382], strides = [1, 1]} : vector<16x384xbf16> to vector<16x382xbf16>
    %c32 = arith.constant 32 : index
    %c0_9 = arith.constant 0 : index
    %10 = vector.load %arg9[%c32, %c0_9] : memref<144x384xbf16, #tpu.memory_space<vmem>>, vector<16x382xbf16>
    tpu.vector_store %arg9[%c32, %c0_9], %9 {strides = array<i32>} : memref<144x384xbf16, #tpu.memory_space<vmem>>, vector<16x382xbf16>,
    %11 = vector.extract_strided_slice %3 {offsets = [0, 0], sizes = [16, 2], strides = [1, 1]} : vector<16x128xbf16> to vector<16x2xbf16>
    %c32_10 = arith.constant 32 : index
    %c382 = arith.constant 382 : index
    %12 = vector.load %arg9[%c32_10, %c382] : memref<144x384xbf16, #tpu.memory_space<vmem>>, vector<16x2xbf16>
    tpu.vector_store %arg9[%c32_10, %c382], %11 {strides = array<i32>} : memref<144x384xbf16, #tpu.memory_space<vmem>>, vector<16x2xbf16>,
    %13 = vector.extract_strided_slice %1 {offsets = [0, 18], sizes = [16, 366], strides = [1, 1]} : vector<16x384xbf16> to vector<16x366xbf16>
    %c48 = arith.constant 48 : index
    %c0_11 = arith.constant 0 : index
    %14 = vector.load %arg9[%c48, %c0_11] : memref<144x384xbf16, #tpu.memory_space<vmem>>, vector<16x366xbf16>
    tpu.vector_store %arg9[%c48, %c0_11], %13 {strides = array<i32>} : memref<144x384xbf16, #tpu.memory_space<vmem>>, vector<16x366xbf16>,
    %15 = vector.extract_strided_slice %3 {offsets = [0, 0], sizes = [16, 18], strides = [1, 1]} : vector<16x128xbf16> to vector<16x18xbf16>
    %c48_12 = arith.constant 48 : index
    %c366 = arith.constant 366 : index
    %16 = vector.load %arg9[%c48_12, %c366] : memref<144x384xbf16, #tpu.memory_space<vmem>>, vector<16x18xbf16>
    tpu.vector_store %arg9[%c48_12, %c366], %15 {strides = array<i32>} : memref<144x384xbf16, #tpu.memory_space<vmem>>, vector<16x18xbf16>,
    %17 = vector.extract_strided_slice %1 {offsets = [0, 19], sizes = [16, 365], strides = [1, 1]} : vector<16x384xbf16> to vector<16x365xbf16>
    %c64 = arith.constant 64 : index
    %c0_13 = arith.constant 0 : index
    %18 = vector.load %arg9[%c64, %c0_13] : memref<144x384xbf16, #tpu.memory_space<vmem>>, vector<16x365xbf16>
    tpu.vector_store %arg9[%c64, %c0_13], %17 {strides = array<i32>} : memref<144x384xbf16, #tpu.memory_space<vmem>>, vector<16x365xbf16>,
    %19 = vector.extract_strided_slice %3 {offsets = [0, 0], sizes = [16, 19], strides = [1, 1]} : vector<16x128xbf16> to vector<16x19xbf16>
    %c64_14 = arith.constant 64 : index
    %c365 = arith.constant 365 : index
    %20 = vector.load %arg9[%c64_14, %c365] : memref<144x384xbf16, #tpu.memory_space<vmem>>, vector<16x19xbf16>
    tpu.vector_store %arg9[%c64_14, %c365], %19 {strides = array<i32>} : memref<144x384xbf16, #tpu.memory_space<vmem>>, vector<16x19xbf16>,
    %21 = vector.extract_strided_slice %1 {offsets = [0, 20], sizes = [16, 364], strides = [1, 1]} : vector<16x384xbf16> to vector<16x364xbf16>
    %c80 = arith.constant 80 : index
    %c0_15 = arith.constant 0 : index
    %22 = vector.load %arg9[%c80, %c0_15] : memref<144x384xbf16, #tpu.memory_space<vmem>>, vector<16x364xbf16>
    tpu.vector_store %arg9[%c80, %c0_15], %21 {strides = array<i32>} : memref<144x384xbf16, #tpu.memory_space<vmem>>, vector<16x364xbf16>,
    %23 = vector.extract_strided_slice %3 {offsets = [0, 0], sizes = [16, 20], strides = [1, 1]} : vector<16x128xbf16> to vector<16x20xbf16>
    %c80_16 = arith.constant 80 : index
    %c364 = arith.constant 364 : index
    %24 = vector.load %arg9[%c80_16, %c364] : memref<144x384xbf16, #tpu.memory_space<vmem>>, vector<16x20xbf16>
    tpu.vector_store %arg9[%c80_16, %c364], %23 {strides = array<i32>} : memref<144x384xbf16, #tpu.memory_space<vmem>>, vector<16x20xbf16>,
    %25 = vector.extract_strided_slice %1 {offsets = [0, 36], sizes = [16, 348], strides = [1, 1]} : vector<16x384xbf16> to vector<16x348xbf16>
    %c96 = arith.constant 96 : index
    %c0_17 = arith.constant 0 : index
    %26 = vector.load %arg9[%c96, %c0_17] : memref<144x384xbf16, #tpu.memory_space<vmem>>, vector<16x348xbf16>
    tpu.vector_store %arg9[%c96, %c0_17], %25 {strides = array<i32>} : memref<144x384xbf16, #tpu.memory_space<vmem>>, vector<16x348xbf16>,
    %27 = vector.extract_strided_slice %3 {offsets = [0, 0], sizes = [16, 36], strides = [1, 1]} : vector<16x128xbf16> to vector<16x36xbf16>
    %c96_18 = arith.constant 96 : index
    %c348 = arith.constant 348 : index
    %28 = vector.load %arg9[%c96_18, %c348] : memref<144x384xbf16, #tpu.memory_space<vmem>>, vector<16x36xbf16>
    tpu.vector_store %arg9[%c96_18, %c348], %27 {strides = array<i32>} : memref<144x384xbf16, #tpu.memory_space<vmem>>, vector<16x36xbf16>,
    %29 = vector.extract_strided_slice %1 {offsets = [0, 37], sizes = [16, 347], strides = [1, 1]} : vector<16x384xbf16> to vector<16x347xbf16>
    %c112 = arith.constant 112 : index
    %c0_19 = arith.constant 0 : index
    %30 = vector.load %arg9[%c112, %c0_19] : memref<144x384xbf16, #tpu.memory_space<vmem>>, vector<16x347xbf16>
    tpu.vector_store %arg9[%c112, %c0_19], %29 {strides = array<i32>} : memref<144x384xbf16, #tpu.memory_space<vmem>>, vector<16x347xbf16>,
    %31 = vector.extract_strided_slice %3 {offsets = [0, 0], sizes = [16, 37], strides = [1, 1]} : vector<16x128xbf16> to vector<16x37xbf16>
    %c112_20 = arith.constant 112 : index
    %c347 = arith.constant 347 : index
    %32 = vector.load %arg9[%c112_20, %c347] : memref<144x384xbf16, #tpu.memory_space<vmem>>, vector<16x37xbf16>
    tpu.vector_store %arg9[%c112_20, %c347], %31 {strides = array<i32>} : memref<144x384xbf16, #tpu.memory_space<vmem>>, vector<16x37xbf16>,
    %33 = vector.extract_strided_slice %1 {offsets = [0, 38], sizes = [16, 346], strides = [1, 1]} : vector<16x384xbf16> to vector<16x346xbf16>
    %c128 = arith.constant 128 : index
    %c0_21 = arith.constant 0 : index
    %34 = vector.load %arg9[%c128, %c0_21] : memref<144x384xbf16, #tpu.memory_space<vmem>>, vector<16x346xbf16>
    tpu.vector_store %arg9[%c128, %c0_21], %33 {strides = array<i32>} : memref<144x384xbf16, #tpu.memory_space<vmem>>, vector<16x346xbf16>,
    %35 = vector.extract_strided_slice %3 {offsets = [0, 0], sizes = [16, 38], strides = [1, 1]} : vector<16x128xbf16> to vector<16x38xbf16>
    %c128_22 = arith.constant 128 : index
    %c346 = arith.constant 346 : index
    %36 = vector.load %arg9[%c128_22, %c346] : memref<144x384xbf16, #tpu.memory_space<vmem>>, vector<16x38xbf16>
    tpu.vector_store %arg9[%c128_22, %c346], %35 {strides = array<i32>} : memref<144x384xbf16, #tpu.memory_space<vmem>>, vector<16x38xbf16>,
    %c0_23 = arith.constant 0 : index
    %c0_24 = arith.constant 0 : index
    %37 = vector.load %arg4[%c0_23, %c0_24] : memref<8x144xbf16, #tpu.memory_space<vmem>>, vector<8x144xbf16>
    %c0_25 = arith.constant 0 : index
    %c0_26 = arith.constant 0 : index
    %38 = vector.load %arg9[%c0_25, %c0_26] : memref<144x384xbf16, #tpu.memory_space<vmem>>, vector<144x384xbf16>
    %cst = arith.constant dense<0.000000e+00> : vector<8x384xf32>
    %39 = tpu.matmul %37, %38, %cst {dimension_numbers = #tpu.dot_dimension_numbers<[1], [0], [0], [1], [0, 0, 1, 1], [], []>} : vector<8x144xbf16>, vector<144x384xbf16>, vector<8x384xf32> -> vector<8x384xf32>
    %c0_27 = arith.constant 0 : index
    %c0_28 = arith.constant 0 : index
    %40 = vector.load %arg5[%c0_27, %c0_28] : memref<8x1xf32, #tpu.memory_space<vmem>>, vector<8x1xf32>
    %41 = vector.broadcast %40 : vector<8x1xf32> to vector<8x384xf32>
    %42 = arith.addf %39, %41 : vector<8x384xf32>
    %43 = arith.truncf %42 : vector<8x384xf32> to vector<8x384xbf16>
    %c0_29 = arith.constant 0 : index
    %c0_30 = arith.constant 0 : index
    %c0_31 = arith.constant 0 : index
    %44 = vector.load %arg7[%c0_29, %c0_30, %c0_31] : memref<1x8x384xbf16, #tpu.memory_space<vmem>>, vector<1x8x384xbf16>
    %45 = vector.shape_cast %44 : vector<1x8x384xbf16> to vector<8x384xbf16>
    %46 = vector.shape_cast %43 : vector<8x384xbf16> to vector<1x8x384xbf16>
    tpu.vector_store %arg7[%c0_29, %c0_30, %c0_31], %46 {strides = array<i32>} : memref<1x8x384xbf16, #tpu.memory_space<vmem>>, vector<1x8x384xbf16>,
    %c0_32 = arith.constant 0 : index
    %c0_33 = arith.constant 0 : index
    %c0_34 = arith.constant 0 : index
    %47 = vector.load %arg6[%c0_32, %c0_33, %c0_34] : memref<1x1x384xf32, #tpu.memory_space<vmem>>, vector<1x1x384xf32>
    %48 = vector.shape_cast %47 : vector<1x1x384xf32> to vector<1x384xf32>
    %49 = vector.broadcast %48 : vector<1x384xf32> to vector<8x384xf32>
    %50 = arith.mulf %42, %49 : vector<8x384xf32>
    %cst_35 = arith.constant dense<0.000000e+00> : vector<8xf32>
    %51 = vector.multi_reduction <add>, %50, %cst_35 [1] : vector<8x384xf32> to vector<8xf32>
    %52 = vector.shape_cast %51 : vector<8xf32> to vector<8x1xf32>
    %c0_36 = arith.constant 0 : index
    %c0_37 = arith.constant 0 : index
    %c0_38 = arith.constant 0 : index
    %c0_39 = arith.constant 0 : index
    %53 = vector.load %arg8[%c0_36, %c0_37, %c0_38, %c0_39] : memref<1x1x8x1xf32, #tpu.memory_space<vmem>>, vector<1x1x8x1xf32>
    %54 = vector.shape_cast %53 : vector<1x1x8x1xf32> to vector<8x1xf32>
    %55 = vector.shape_cast %52 : vector<8x1xf32> to vector<1x1x8x1xf32>
    tpu.vector_store %arg8[%c0_36, %c0_37, %c0_38, %c0_39], %55 {strides = array<i32>} : memref<1x1x8x1xf32, #tpu.memory_space<vmem>>, vector<1x1x8x1xf32>,
    return
  }
  func.func @transform_0(%arg0: i32, %arg1: i32) -> (i32, i32, i32) {
    %c0_i32 = arith.constant 0 : i32
    %c0_i32_0 = arith.constant 0 : i32
    return %arg0, %c0_i32, %arg1 : i32, i32, i32
  }
  func.func @transform_1(%arg0: i32, %arg1: i32) -> (i32, i32, i32) {
    %c1_i32 = arith.constant 1 : i32
    %0 = arith.addi %arg1, %c1_i32 : i32
    %c3_i32 = arith.constant 3 : i32
    %1 = arith.muli %0, %c3_i32 : i32
    %c0_i32 = arith.constant 0 : i32
    %c0_i32_0 = arith.constant 0 : i32
    return %arg0, %c0_i32, %1 : i32, i32, i32
  }
  func.func @transform_2(%arg0: i32, %arg1: i32) -> (i32, i32) {
    %c0_i32 = arith.constant 0 : i32
    %c0_i32_0 = arith.constant 0 : i32
    %c0_i32_1 = arith.constant 0 : i32
    return %c0_i32, %c0_i32_0 : i32, i32
  }
  func.func @transform_3(%arg0: i32, %arg1: i32) -> (i32, i32) {
    %c0_i32 = arith.constant 0 : i32
    %c0_i32_0 = arith.constant 0 : i32
    %c0_i32_1 = arith.constant 0 : i32
    return %c0_i32, %c0_i32_0 : i32, i32
  }
  func.func @transform_4(%arg0: i32, %arg1: i32) -> (i32, i32, i32) {
    %c0_i32 = arith.constant 0 : i32
    %c0_i32_0 = arith.constant 0 : i32
    %c0_i32_1 = arith.constant 0 : i32
    return %c0_i32, %c0_i32_0, %arg1 : i32, i32, i32
  }
  func.func @transform_5(%arg0: i32, %arg1: i32) -> (i32, i32, i32) {
    %c0_i32 = arith.constant 0 : i32
    %c0_i32_0 = arith.constant 0 : i32
    return %arg0, %c0_i32, %arg1 : i32, i32, i32
  }
  func.func @transform_6(%arg0: i32, %arg1: i32) -> (i32, i32, i32, i32) {
    %c0_i32 = arith.constant 0 : i32
    %c0_i32_0 = arith.constant 0 : i32
    %c0_i32_1 = arith.constant 0 : i32
    return %arg0, %arg1, %c0_i32, %c0_i32_0 : i32, i32, i32, i32
  }
}

</mosaic_0001>

<bundles_post_ra>
// kernel: conv_2d_forward.1
= control target key start
LH: loop header
LB: loop body
LE: loop exit
PB: predicated region body
PF: predicated region fallthrough
CT: control target
= control target key end

     0   :  { %s1668_s21 = smov 0   ;;  %s1670_s22 = smov 0   ;;  %s1779_s0 = inlined_call_operand.vmem [shape: bf16[2,16,512], index: 0, kind: input, shape index: {}, may-alias: {0,1}]   ;;  %s1780_s1 = inlined_call_operand.vmem [shape: bf16[2,16,512], index: 1, kind: input, shape index: {}, may-alias: {0,1}]   ;;  %s1781_s2 = inlined_call_operand.vmem [shape: bf16[8,144], index: 2, kind: input, shape index: {}]   ;;  %s1782_s3 = inlined_call_operand.vmem [shape: f32[8,1], index: 3, kind: input, shape index: {}]   ;;  %s1783_s4 = inlined_call_operand.vmem [shape: f32[1,1,384], index: 4, kind: input, shape index: {}]   ;;  %s1784_s5 = inlined_call_operand.vmem [shape: bf16[2,8,384], index: 5, kind: output, shape index: {0}]   ;;  %s1785_s6 = inlined_call_operand.vmem [shape: f32[2,1,8,1], index: 6, kind: output, shape index: {1}]  }
   0x1   :  { %s1672_s23 = smov 0   ;;  %s1674_s24 = smov 0  }
   0x2   :  { %s1676_s25 = smov 0  }
   0x3 LB: > { %s29_s26 = sadd.s32 1, %s1614_s24  ;;  %p45_p1 = scmp.ne.s32.totalorder %s1606_s22, %s1602_s21  ;;  %s1618_s25 = sphi %s1676_s25, %s17_s25   ;;  %s1614_s24 = sphi %s1674_s24, %s1790_s24   ;;  %s1610_s23 = sphi %s1672_s23, %s1789_s23   ;;  %s1606_s22 = sphi %s1670_s22, %s1788_s22   ;;  %s1602_s21 = sphi %s1668_s21, %s1787_s21  }
   0x4   : > { %p31_p0 = scmp.ge.s32.totalorder %s29_s26, 2  ;;  %p46_p2 = scmp.eq.s32.totalorder %s1618_s25, 0 }
   0x5   : > { %s38_s29 = sadd.s32 1, %s1606_s22  ;;  %p1432_p5 = scmp.ge.s32.totalorder %s1618_s25, 2 }
   0x6   : > { %s1792_s26 = smov (%p31_p0, %s29_s26), 0  ;;  %p1699_p3 = por %p46_p2, %p45_p1 }
   0x7   : > { %s33_s28 = ssub.s32 %s1614_s24, %s1792_s26  ;;  %241 = sbr.rel (%p1432_p5) target bundleno = 38 (0x26), region = 28 }
   0x8   : > { %p36_p4 = scmp.eq.s32.totalorder %s33_s28, 0 }
   0xa   : > { %s1707_s30 = scalar_select %p36_p4, %s1606_s22, %s38_s29  }
   0xe   : > { %244 = sbr.rel (!%p1699_p3) target bundleno = 31 (0x1f), region = 32  ;;  %s246_s7 = sand.u32 (%p1699_p3), 1, %s1606_s22  }
   0xf   : > { %s1468_s8 = sshll.u32 (%p1699_p3), %s1614_s24, 5  ;;  %s1472_s9 = smul.u32 (%p1699_p3), 24, %s246_s7 }
  0x10   : > { %s258_s12 = scalar_lea.vmem (%p1699_p3), %s1779_s0, %s1468_s8   ;;  %s1620_s14 = smov (%p1699_p3), 0  }
  0x11   : > { %s248_s13 = scalar_lea.vmem (%p1699_p3), [#allocation3], %s1472_s9  }
  0x15 LB: >> { %v643_v0 = vld [vmem:[%s258_s12] sm:$0xff]  ;;  %v645_v1 = vld [vmem:[%s258_s12 + $0x10] sm:$0xff]  ;;  %s637_s14 = sadd.s32 1, %s1622_s14   ;;  %s1622_s14 = sphi %s1620_s14, %s637_s14  }
  0x16   : >> { %644 = vst [vmem:[%s248_s13] sm:$0xff] %v643_v0  ;;  %646 = vst [vmem:[%s248_s13 + $0xc] sm:$0xff] %v645_v1  ;;  %p636_p6 = scmp.ge.s32.totalorder %s637_s14, 1 }
  0x17   : > { %v1443_v2 = vld [vmem:[%s258_s12 + $0x8] sm:$0xf] (%p636_p6)  ;;  %v1445_v3 = vld [vmem:[%s258_s12 + $0x18] sm:$0xf] (%p636_p6) }
  0x18   : > { %639 = sbr.rel (!%p636_p6) target bundleno = 21 (0x15), region = 256  ;;  %1444 = vst [vmem:[%s248_s13 + $0x8] sm:$0xf] (%p636_p6), %v1443_v2  ;;  %1446 = vst [vmem:[%s248_s13 + $0x14] sm:$0xf] (%p636_p6), %v1445_v3 }
  0x1f PF: > { %670 = sbr.rel (!%p1699_p3) target bundleno = 38 (0x26), region = 98  ;;  %s672_s15 = sand.u32 (%p1699_p3), 1, %s1606_s22  }
  0x20   : > { %s1469_s16 = sshll.u32 (%p1699_p3), %s1614_s24, 5  ;;  %s1447_s17 = sshll.u32 (%p1699_p3), %s672_s15, 3 }
  0x21   : > { %s1267_s20 = scalar_lea.vmem (%p1699_p3), %s1780_s1, %s1469_s16  ;;  %s674_s28 = scalar_lea.vmem (%p1699_p3), [#allocation4], %s1447_s17 }
  0x22   : > { %v1450_v4 = vld [vmem:[%s1267_s20 + $0xc] sm:$0xf] (%p1699_p3)  ;;  %v1451_v5 = vld [vmem:[%s1267_s20 + $0x1c] sm:$0xf] (%p1699_p3) }
  0x23   : > { %697 = vst [vmem:[%s674_s28] sm:$0xf] (%p1699_p3), %v1450_v4  ;;  %699 = vst [vmem:[%s674_s28 + $0x4] sm:$0xf] (%p1699_p3), %v1451_v5 }
  0x26 PF: > { %p1452_p7 = scmp.ge.s32.totalorder %s1618_s25, 1  ;;  %p725_p8 = scmp.lt.s32.totalorder %s1618_s25, 3 }
  0x28   : > { %p726_p9 = pnand %p1452_p7, %p725_p8 }
  0x29   : > { %s732_s27 = sand.u32 (!%p726_p9), 1, %s1602_s21   ;;  %s1624_s9 = smov (!%p726_p9), 127   ;;  %v1625_v9 = vmov (!%p726_p9), 0   ;;  %v1733_v11 = vld [vmem:[%s1781_s2] sm:$0xff] (!%p726_p9)  ;;  %vm1055_vm0 = vcmask (!%p726_p9), 130048   ;;  %vm848_vm1 = vcmask (!%p726_p9), 1039360  }
  0x2a   : > { %729 = sbr.rel (%p726_p9) target bundleno = 595 (0x253), region = 139  ;;  %s1453_s7 = sshll.u32 (!%p726_p9), %s732_s27, 3  ;;  %1100 = vmatprep.subr.bf16.mxu1 (!%p726_p9), %v1625_v9  ;;  %1556 = vset.pattern.permute.xlu0 (!%p726_p9), %v1625_v9  ;;  %v1461_v12 = vcombine.high (!%p726_p9), %v1733_v11, %v1733_v11  ;;  %v1043_v13 = vld [vmem:[%s1782_s3] sm:$0xff] (!%p726_p9)  ;;  %vm874_vm2 = vcmask (!%p726_p9), 1031168   ;;  %vm866_vm3 = vcmask (!%p726_p9), 1048568   ;;  %vm895_vm4 = vcmask (!%p726_p9), 900096  }
  0x2b   : > { %s1473_s29 = smul.u32 (!%p726_p9), 24, %s732_s27  ;;  %s741_s10 = scalar_lea.vmem (!%p726_p9), [#allocation4], %s1453_s7  ;;  %vm887_vm5 = vcmask (!%p726_p9), 1048560   ;;  %vm916_vm6 = vcmask (!%p726_p9), 891904   ;;  %vm908_vm7 = vcmask (!%p726_p9), 1048432   ;;  %vm937_vm8 = vcmask (!%p726_p9), 883712  }
  0x2c   : > { %s1626_s21 = smov (!%p726_p9), 126   ;;  %v1561_v10 = vld [vmem:[%s741_s10] sm:$0xff] (!%p726_p9)   ;;  %s1627_s11 = smov (!%p726_p9), 110   ;;  %1462 = vmatprep.mubr.msk.bf16.mxu0 (!%p726_p9), %vm1055_vm0, %v1461_v12  ;;  %1463 = vmatprep.mubr.msk.bf16.mxu1 (!%p726_p9), %vm1055_vm0, %v1461_v12  ;;  %vm929_vm9 = vcmask (!%p726_p9), 1048424   ;;  %vm958_vm10 = vcmask (!%p726_p9), 752640   ;;  %vm950_vm11 = vcmask (!%p726_p9), 1048416   ;;  %v1460_v4 = vcombine.low (!%p726_p9), %v1733_v11, %v1733_v11 }
  0x2d   : > { %s734_s8 = scalar_lea.vmem (!%p726_p9), [#allocation3], %s1473_s29  ;;  %s1628_s12 = smov (!%p726_p9), 109   ;;  %vm979_vm12 = vcmask (!%p726_p9), 744448   ;;  %vm971_vm13 = vcmask (!%p726_p9), 1048288   ;;  %vm1000_vm14 = vcmask (!%p726_p9), 736256   ;;  %vm992_vm15 = vcmask (!%p726_p9), 1048280  }
  0x2e   : > { %v1557_v6 = vld [vmem:[%s734_s8 + $0x4] ss:$12 sps:$4 sm:$0xff] (!%p726_p9)   ;;  %v1559_v7 = vld [vmem:[%s734_s8] ss:$12 sps:$4 sm:$0xff] (!%p726_p9)   ;;  %v1560_v8 = vld [vmem:[%s734_s8 + $0x8] ss:$12 sps:$4 sm:$0xff] (!%p726_p9)  }
  0x2f   : > { %844 = vrot.lane.b32.xlu0 (!%p726_p9), %v1557_v6, %s1624_s9  ;;  %1059 = vmatprep.subr.bf16.mxu0 (!%p726_p9), %v1557_v6  ;;  %s1629_s13 = smov (!%p726_p9), 108   ;;  %s1630_s14 = smov (!%p726_p9), 92   ;;  %vm1013_vm0 = vcmask (!%p726_p9), 1048272   ;;  %v1155_v11 = vld [vmem:[%s1783_s4] sm:$0x7] (!%p726_p9) }
  0x30   : > { %842 = vrot.lane.b32.xlu1 (!%p726_p9), %v1559_v7, %s1624_s9  ;;  %1060 = vmatpush1.bf16.msra.mxu0 (!%p726_p9), %v1559_v7  ;;  %s1631_s15 = smov (!%p726_p9), 91   ;;  %s1632_s18 = smov (!%p726_p9), 90  }
  0x31   : > { %1101 = vmatpush1.bf16.msra.mxu1 %v1560_v8  ;;  %p800_p10 = scmp.lt.s32.totalorder %s1610_s23, 1 }
  0x32   : > { %1102 = vmatprep.subr.bf16.mxu1 %v1625_v9 }
  0x33   : > { %846 = vrot.lane.b32.xlu0 %v1560_v8, %s1624_s9  ;;  %s1794_s23 = smov (!%p800_p10, %s1610_s23), 1 }
  0x34   : > { %870 = vrot.lane.b32.xlu1 %v1557_v6, %s1626_s21  ;;  %s1474_s29 = smul.u32 12, %s1794_s23  ;;  %s1455_s10 = sshll.u32 %s1794_s23, 3 }
  0x37   : > { %872 = vrot.lane.b32.xlu0 %v1560_v8, %s1626_s21 }
  0x38   : > { %863 = vrot.lane.b32.xlu1 %v1561_v10, %s1624_s9  ;;  %s807_s9 = scalar_lea.vmem %s1784_s5, %s1474_s29 }
  0x3b   : > { %868 = vrot.lane.b32.xlu0 %v1559_v7, %s1626_s21 }
  0x3c   : > { %891 = vrot.lane.b32.xlu1 %v1557_v6, %s1627_s11 }
  0x3f   : > { %893 = vrot.lane.b32.xlu0 %v1560_v8, %s1627_s11 }
  0x40   : > { %884 = vrot.lane.b32.xlu1 %v1561_v10, %s1626_s21 }
  0x43   : > { %889 = vrot.lane.b32.xlu0 %v1559_v7, %s1627_s11 }
  0x44   : > { %912 = vrot.lane.b32.xlu1 %v1557_v6, %s1628_s12 }
  0x47   : > { %914 = vrot.lane.b32.xlu0 %v1560_v8, %s1628_s12 }
  0x48   : > { %905 = vrot.lane.b32.xlu1 %v1561_v10, %s1627_s11 }
  0x4b   : > { %910 = vrot.lane.b32.xlu0 %v1559_v7, %s1628_s12 }
  0x4c   : > { %933 = vrot.lane.b32.xlu1 %v1557_v6, %s1629_s13 }
  0x4f   : > { %935 = vrot.lane.b32.xlu0 %v1560_v8, %s1629_s13 }
  0x50   : > { %926 = vrot.lane.b32.xlu1 %v1561_v10, %s1628_s12  ;;  %s815_s12 = scalar_lea.vmem %s1785_s6, %s1455_s10 }
  0x53   : > { %931 = vrot.lane.b32.xlu0 %v1559_v7, %s1629_s13 }
  0x54   : > { %954 = vrot.lane.b32.xlu1 %v1557_v6, %s1630_s14 }
  0x57   : > { %956 = vrot.lane.b32.xlu0 %v1560_v8, %s1630_s14 }
  0x58   : > { %947 = vrot.lane.b32.xlu1 %v1561_v10, %s1629_s13 }
  0x5b   : > { %952 = vrot.lane.b32.xlu0 %v1559_v7, %s1630_s14 }
  0x5c   : > { %975 = vrot.lane.b32.xlu1 %v1557_v6, %s1631_s15 }
  0x5f   : > { %977 = vrot.lane.b32.xlu0 %v1560_v8, %s1631_s15 }
  0x60   : > { %968 = vrot.lane.b32.xlu1 %v1561_v10, %s1630_s14 }
  0x63   : > { %973 = vrot.lane.b32.xlu0 %v1559_v7, %s1631_s15 }
  0x64   : > { %996 = vrot.lane.b32.xlu1 %v1557_v6, %s1632_s18 }
  0x67   : > { %998 = vrot.lane.b32.xlu0 %v1560_v8, %s1632_s18 }
  0x68   : > { %989 = vrot.lane.b32.xlu1 %v1561_v10, %s1631_s15 }
  0x6b   : > { %994 = vrot.lane.b32.xlu0 %v1559_v7, %s1632_s18  ;;  %v1157_v7 = vlaneseq }
  0x6c   : > { %1010 = vrot.lane.b32.xlu1 %v1561_v10, %s1632_s18 }
  0x6d   : > { %v1158_v8 = vshrl.u32 %v1157_v7, 7 }
  0x6f   : > { %1046 = vperm.xlu0 %1556, %v1043_v13   ;;  %v1159_v10 = vsub.s32 0, %v1158_v8  ;;  %v1163_v12 = vsub.s32 1, %v1158_v8 }
  0xa1   : > { %v845_v14 = vpop.permute.xlu0 %844 }
  0xa2   : > { %v843_v15 = vpop.permute.xlu1 %842 }
  0xa3   : > { %v849_v16 = vsel %vm848_vm1, %v843_v15, %v845_v14 }
  0xa5   : > { %v847_v17 = vpop.permute.xlu0 %846 }
  0xa6   : > { %v850_v18 = vsel %vm848_vm1, %v845_v14, %v847_v17  ;;  %857 = vst.msk [vmem:[#allocation2 + $0x28] sm:$0xff] %vm848_vm1, %v847_v17  ;;  %v871_v19 = vpop.permute.xlu1 %870  ;;  %v1160_v14 = vrot.slane %v1155_v11, %v1159_v10  ;;  %vm1179_vm1 = vcmask 7168  }
  0xa7   : > { %1061 = vmatprep.subr.bf16.mxu0 %v850_v18 }
  0xa8   : > { %1062 = vmatpush1.bf16.msra.mxu0 %v849_v16 }
  0xa9   : > { %v873_v20 = vpop.permute.xlu0 %872 }
  0xaa   : > { %v876_v21 = vsel %vm874_vm2, %v871_v19, %v873_v20  ;;  %883 = vst.msk [vmem:[#allocation2 + $0x40] sm:$0xff] %vm874_vm2, %v873_v20  ;;  %v864_v22 = vpop.permute.xlu1 %863 }
  0xab   : > { %867 = vst.msk [vmem:[#allocation2 + $0x28] sm:$0xff] %vm866_vm3, %v864_v22  ;;  %1063 = vmatprep.subr.bf16.mxu0 %v876_v21  ;;  %v1167_v21 = vsub.s32 2, %v1158_v8 }
  0xad   : > { %v869_v23 = vpop.permute.xlu0 %868 }
  0xae   : > { %v875_v24 = vsel %vm874_vm2, %v869_v23, %v871_v19  ;;  %v892_v25 = vpop.permute.xlu1 %891 }
  0xaf   : > { %1064 = vmatpush1.bf16.msra.mxu0 %v875_v24 }
  0xb1   : > { %v894_v26 = vpop.permute.xlu0 %893 }
  0xb2   : > { %v897_v27 = vsel %vm895_vm4, %v892_v25, %v894_v26  ;;  %904 = vst.msk [vmem:[#allocation2 + $0x58] sm:$0xff] %vm895_vm4, %v894_v26  ;;  %v885_v28 = vpop.permute.xlu1 %884  ;;  %v1021_v29 = vld [vmem:[#allocation2 + $0x28] sm:$0xff]  ;;  %v1168_v26 = vrot.slane %v1155_v11, %v1167_v21 }
  0xb3   : > { %888 = vst.msk [vmem:[#allocation2 + $0x40] sm:$0xff] %vm887_vm5, %v885_v28  ;;  %1103 = vmatpush1.bf16.msra.mxu1 %v1021_v29  ;;  %1065 = vmatprep.subr.bf16.mxu0 %v897_v27 }
  0xb4   : > { %1104 = vmatprep.subr.bf16.mxu1 %v1625_v9 }
  0xb5   : > { %v890_v30 = vpop.permute.xlu0 %889 }
  0xb6   : > { %v896_v31 = vsel %vm895_vm4, %v890_v30, %v892_v25  ;;  %v913_v32 = vpop.permute.xlu1 %912 }
  0xb7   : > { %1066 = vmatpush1.bf16.msra.mxu0 %v896_v31 }
  0xb9   : > { %v915_v33 = vpop.permute.xlu0 %914 }
  0xba   : > { %v918_v34 = vsel %vm916_vm6, %v913_v32, %v915_v33  ;;  %925 = vst.msk [vmem:[#allocation2 + $0x70] sm:$0xff] %vm916_vm6, %v915_v33  ;;  %v906_v35 = vpop.permute.xlu1 %905  ;;  %v1024_v36 = vld [vmem:[#allocation2 + $0x40] sm:$0xff] }
  0xbb   : > { %909 = vst.msk [vmem:[#allocation2 + $0x58] sm:$0xff] %vm908_vm7, %v906_v35  ;;  %1105 = vmatpush1.bf16.msra.mxu1 %v1024_v36  ;;  %1067 = vmatprep.subr.bf16.mxu0 %v918_v34 }
  0xbc   : > { %1106 = vmatprep.subr.bf16.mxu1 %v1625_v9 }
  0xbd   : > { %v911_v37 = vpop.permute.xlu0 %910 }
  0xbe   : > { %v917_v38 = vsel %vm916_vm6, %v911_v37, %v913_v32  ;;  %v934_v39 = vpop.permute.xlu1 %933 }
  0xbf   : > { %1068 = vmatpush1.bf16.msra.mxu0 %v917_v38 }
  0xc1   : > { %v936_v40 = vpop.permute.xlu0 %935 }
  0xc2   : > { %v939_v41 = vsel %vm937_vm8, %v934_v39, %v936_v40  ;;  %946 = vst.msk [vmem:[#allocation2 + $0x88] sm:$0xff] %vm937_vm8, %v936_v40  ;;  %v927_v42 = vpop.permute.xlu1 %926  ;;  %v1027_v43 = vld [vmem:[#allocation2 + $0x58] sm:$0xff] }
  0xc3   : > { %930 = vst.msk [vmem:[#allocation2 + $0x70] sm:$0xff] %vm929_vm9, %v927_v42  ;;  %1107 = vmatpush1.bf16.msra.mxu1 %v1027_v43  ;;  %1069 = vmatprep.subr.bf16.mxu0 %v939_v41 }
  0xc4   : > { %1108 = vmatprep.subr.bf16.mxu1 %v1625_v9 }
  0xc5   : > { %v932_v44 = vpop.permute.xlu0 %931 }
  0xc6   : > { %v938_v45 = vsel %vm937_vm8, %v932_v44, %v934_v39  ;;  %v955_v46 = vpop.permute.xlu1 %954 }
  0xc7   : > { %1070 = vmatpush1.bf16.msra.mxu0 %v938_v45 }
  0xc9   : > { %v957_v47 = vpop.permute.xlu0 %956 }
  0xca   : > { %v960_v48 = vsel %vm958_vm10, %v955_v46, %v957_v47  ;;  %967 = vst.msk [vmem:[#allocation2 + $0xa0] sm:$0xff] %vm958_vm10, %v957_v47  ;;  %v948_v49 = vpop.permute.xlu1 %947  ;;  %v1030_v50 = vld [vmem:[#allocation2 + $0x70] sm:$0xff] }
  0xcb   : > { %951 = vst.msk [vmem:[#allocation2 + $0x88] sm:$0xff] %vm950_vm11, %v948_v49  ;;  %1109 = vmatpush1.bf16.msra.mxu1 %v1030_v50  ;;  %1071 = vmatprep.subr.bf16.mxu0 %v960_v48 }
  0xcc   : > { %1110 = vmatprep.subr.bf16.mxu1 %v1625_v9 }
  0xcd   : > { %v953_v51 = vpop.permute.xlu0 %952 }
  0xce   : > { %v959_v52 = vsel %vm958_vm10, %v953_v51, %v955_v46  ;;  %v976_v53 = vpop.permute.xlu1 %975 }
  0xcf   : > { %1072 = vmatpush1.bf16.msra.mxu0 %v959_v52 }
  0xd1   : > { %v978_v54 = vpop.permute.xlu0 %977 }
  0xd2   : > { %v981_v55 = vsel %vm979_vm12, %v976_v53, %v978_v54  ;;  %988 = vst.msk [vmem:[#allocation2 + $0xb8] sm:$0xff] %vm979_vm12, %v978_v54  ;;  %v969_v56 = vpop.permute.xlu1 %968  ;;  %v1033_v57 = vld [vmem:[#allocation2 + $0x88] sm:$0xff] }
  0xd3   : > { %972 = vst.msk [vmem:[#allocation2 + $0xa0] sm:$0xff] %vm971_vm13, %v969_v56  ;;  %1111 = vmatpush1.bf16.msra.mxu1 %v1033_v57  ;;  %1073 = vmatprep.subr.bf16.mxu0 %v981_v55 }
  0xd4   : > { %1112 = vmatprep.subr.bf16.mxu1 %v1625_v9 }
  0xd5   : > { %v974_v58 = vpop.permute.xlu0 %973 }
  0xd6   : > { %v980_v59 = vsel %vm979_vm12, %v974_v58, %v976_v53  ;;  %v997_v60 = vpop.permute.xlu1 %996 }
  0xd7   : > { %1074 = vmatpush1.bf16.msra.mxu0 %v980_v59 }
  0xd9   : > { %v999_v61 = vpop.permute.xlu0 %998 }
  0xda   : > { %v1002_v62 = vsel %vm1000_vm14, %v997_v60, %v999_v61  ;;  %1009 = vst.msk [vmem:[#allocation2 + $0xd0] sm:$0xff] %vm1000_vm14, %v999_v61  ;;  %v990_v63 = vpop.permute.xlu1 %989  ;;  %v1036_v0 = vld [vmem:[#allocation2 + $0xa0] sm:$0xff] }
  0xdb   : > { %993 = vst.msk [vmem:[#allocation2 + $0xb8] sm:$0xff] %vm992_vm15, %v990_v63  ;;  %1113 = vmatpush1.bf16.msra.mxu1 %v1036_v0  ;;  %1075 = vmatprep.subr.bf16.mxu0 %v1002_v62 }
  0xdc   : > { %1114 = vmatprep.subr.bf16.mxu1 %v1625_v9 }
  0xdd   : > { %v995_v1 = vpop.permute.xlu0 %994 }
  0xde   : > { %v1001_v2 = vsel %vm1000_vm14, %v995_v1, %v997_v60  ;;  %v1011_v3 = vpop.permute.xlu1 %1010 }
  0xdf   : > { %1014 = vst.msk [vmem:[#allocation2 + $0xd0] sm:$0xff] %vm1013_vm0, %v1011_v3  ;;  %1076 = vmatpush1.bf16.msra.mxu0 %v1001_v2 }
  0xe2   : > { %v1039_v5 = vld [vmem:[#allocation2 + $0xb8] sm:$0xff]  ;;  %1092 = vmatmul.mubr.bf16.vlgmr.msra.gmra.mrb[0].mxu0 %v1460_v4 }
  0xe3   : > { %1115 = vmatpush1.bf16.msra.mxu1 %v1039_v5 }
  0xe4   : > { %1116 = vmatprep.subr.bf16.mxu1 %v1625_v9  ;;  %v1164_v9 = vrot.slane %v1155_v11, %v1163_v12 }
  0xe6   : > { %v1042_v6 = vld [vmem:[#allocation2 + $0xd0] sm:$0xff] }
  0xe7   : > { %1117 = vmatpush1.bf16.msra.mxu1 %v1042_v6 }
  0xea   : > { %1133 = vmatmul.mubr.bf16.vlgmr.msra.gmra.mrb[0].mxu1 %v1460_v4 }
  0xee   : > { %v1047_v13 = vpop.permute.xlu0 %1046 }
 0x1b5   : > { %v1093_v15 = vpop.f32.mrb[0].mxu0 }
 0x1b6   : > { %v1094_v16 = vadd.f32 %v1093_v15, %v1047_v13  ;;  %v1095_v17 = vpop.f32.mrb[1].mxu0 }
 0x1b7   : > { %v1096_v18 = vadd.f32 %v1095_v17, %v1047_v13  ;;  %v1097_v19 = vpop.f32.mrb[2].mxu0 }
 0x1b8   : > { %v1172_v20 = vmul.f32 %v1160_v14, %v1094_v16  ;;  %v1098_v22 = vpop.f32.mrb[3].mxu0 }
 0x1b9   : > { %v1470_v23 = vpack.c.bf16 %v1096_v18, %v1094_v16  ;;  %v1173_v24 = vmul.f32 %v1164_v9, %v1096_v18 }
 0x1bb   : > { %1153 = vst [vmem:[%s807_s9] sm:$0xff] %v1470_v23  ;;  %v1175_v25 = vadd.f32 %v1173_v24, %v1172_v20 }
 0x1bd   : > { %v1134_v27 = vpop.f32.mrb[0].mxu1 }
 0x1be   : > { %v1135_v28 = vadd.f32 %v1134_v27, %v1047_v13  ;;  %v1136_v29 = vpop.f32.mrb[1].mxu1 }
 0x1bf   : > { %v1137_v30 = vpop.f32.mrb[2].mxu1 }
 0x1c0   : > { %v1471_v31 = vpack.c.bf16 %v1135_v28, %v1135_v28  ;;  %v1174_v32 = vmul.f32 %v1168_v26, %v1135_v28  ;;  %v1138_v33 = vpop.f32.mrb[3].mxu1 }
 0x1c2   : > { %1154 = vst [vmem:[%s807_s9 + $0x8] sm:$0xf] %v1471_v31  ;;  %v1176_v34 = vadd.f32 %v1175_v25, %v1174_v32 }
 0x1c4   : > { %1177 = vadd.xlane.f32.xlu1 %v1176_v34 }
 0x251   : > { %v1178_v35 = vpop.xlane.xlu1 %1177 }
 0x252   : > { %1180 = vst.msk [vmem:[%s815_s12] sm:$0xff] %vm1179_vm1, %v1178_v35 }
 0x253 PF: > { %s17_s25 = sadd.s32 1, %s1618_s25   ;;  %s1787_s21 = smov %s1606_s22 }
 0x254   : > { %p14_p11 = scmp.ge.s32.totalorder %s17_s25, 4   ;;  %s1788_s22 = smov %s1707_s30 }
 0x255   : > { %s1789_s23 = smov %s1614_s24  ;;  %s1790_s24 = smov %s1792_s26 }
 0x256   :  { %16 = sbr.rel (!%p14_p11) target bundleno = 3 (0x3), region = 267 }

</bundles_post_ra>
